<compile_context>
chip_gen: v5e
topology: v5e:2x2
jax: 0.10.0
libtpu: 0.0.40
codegen_flags: <defaults>
</compile_context>

<pallas_src>
import math
import numpy as np
import jax
import jax.numpy as jnp
from jax.experimental import pallas as pl
from jax.experimental.pallas import tpu as pltpu


def _round_up(x, m):
    return ((x + m - 1) // m) * m


# --------------------- fused GEMM + bias Pallas kernels ----------------------

def _tt_gemm_bias_kernel(x_ref, w_ref, b_ref, o_ref):
    a = x_ref[...].astype(jnp.bfloat16)              # cheap VPU cast, feeds MXU
    acc = jnp.dot(a, w_ref[...], preferred_element_type=jnp.float32)
    o_ref[...] = acc + b_ref[...]                    # bias fused in the epilogue


def _tt_gemm_kernel(x_ref, w_ref, o_ref):
    a = x_ref[...].astype(jnp.bfloat16)
    o_ref[...] = jnp.dot(a, w_ref[...], preferred_element_type=jnp.float32)


def tt_dense_forward(x, w_bf16, bias_f32):
    """y = x @ W (+ bias) as a single batch-tiled pallas_call (f32 out)."""
    B, K = x.shape
    Kw, N = w_bf16.shape
    assert K == Kw

    if B <= 256:
        tile_m, m_pad = B, B                         # single full-extent block
    else:
        tile_m = 256
        m_pad = _round_up(B, tile_m)
    x_p = x if m_pad == B else jnp.pad(x, ((0, m_pad - B), (0, 0)))
    grid = (m_pad // tile_m,)

    in_specs = [pl.BlockSpec((tile_m, K), lambda i: (i, 0)),   # activations tile
                pl.BlockSpec((K, N), lambda i: (0, 0))]        # weight, resident
    operands = [x_p, w_bf16]
    if bias_f32 is not None:
        in_specs.append(pl.BlockSpec((1, N), lambda i: (0, 0)))
        operands.append(bias_f32.reshape(1, N))
        kernel = _tt_gemm_bias_kernel
    else:
        kernel = _tt_gemm_kernel

    y = pl.pallas_call(
        kernel,
        out_shape=jax.ShapeDtypeStruct((m_pad, N), jnp.float32),
        grid=grid,
        in_specs=in_specs,
        out_specs=pl.BlockSpec((tile_m, N), lambda i: (i, 0)),
        compiler_params=pltpu.CompilerParams(
            dimension_semantics=("parallel",)),      # megacore split on v7x
    )(*operands)
    return y if m_pad == B else y[:B]


# -------------------------------- TT module ----------------------------------

class TTPallas:
    """Tensor-Train linear layer (forward only), fused single-kernel GEMM."""

    def __init__(self, input_shape, output_shape, ranks, bias=True, key=None):
        assert len(input_shape) == len(output_shape)
        assert len(input_shape) - 1 == len(ranks)
        self.input_shape = tuple(input_shape)
        self.output_shape = tuple(output_shape)
        self.ranks = (1,) + tuple(ranks) + (1,)
        d = len(input_shape)

        if key is None:
            key = jax.random.PRNGKey(0)
        keys = jax.random.split(key, d + 1)

        # Deterministic synthetic init mirroring xavier_normal(core, [0,2], [1,3]).
        self.cores = []
        for i in range(d):
            shape = (self.input_shape[i], self.output_shape[i],
                     self.ranks[i], self.ranks[i + 1])
            fan_in = self.input_shape[i] * self.ranks[i]
            fan_out = self.output_shape[i] * self.ranks[i + 1]
            std = math.sqrt(2.0 / (fan_in + fan_out))
            self.cores.append(
                std * jax.random.normal(keys[i], shape, dtype=jnp.float32))

        if bias:
            fan_in_total = math.prod(self.input_shape)
            bound = 1.0 / math.sqrt(fan_in_total) if fan_in_total > 0 else 0.0
            self.bias = jax.random.uniform(
                keys[-1], (math.prod(self.output_shape),),
                dtype=jnp.float32, minval=-bound, maxval=bound)
        else:
            self.bias = None

        # ---- hoisted preprocessing: fold all TT cores into dense W once ----
        # W[(i0..i_{d-1}), (o0..o_{d-1})] = sum_r prod_k G_k[i_k, o_k, r_k, r_{k+1}]
        W = self.cores[0][:, :, 0, :]                # (I0, O0, r1)
        for G in self.cores[1:]:
            P, Q, _ = W.shape
            Ik, Ok, _, rr = G.shape
            W = jnp.einsum('pqr,iors->piqos', W, G).reshape(P * Ik, Q * Ok, rr)
        self.w_f32 = W[..., 0]                       # (prod I, prod O), f32
        self.w_bf16 = self.w_f32.astype(jnp.bfloat16)  # MXU operand, stored once

    def __call__(self, x):
        # Whole TT chain + bias = one fused, batch-tiled Pallas GEMM.
        return tt_dense_forward(x, self.w_bf16, self.bias)

    # pure-JAX f32 reference: explicit TT contraction chain (independent of
    # the folded weight used by the kernel path).
    def reference(self, x):
        B = x.shape[0]
        I, O, r = self.input_shape, self.output_shape, self.ranks
        d = len(I)
        t = x.reshape((B,) + I)
        t = jnp.moveaxis(t, 1, -1)[..., None]        # (B, I1..I_{d-1}, I0, r0=1)
        for k in range(d):
            lead = t.shape[:-2]
            S = t.reshape((math.prod(lead), I[k] * r[k]))
            C = jnp.transpose(self.cores[k], (0, 2, 1, 3)).reshape(
                (I[k] * r[k], O[k] * r[k + 1]))
            t = (S @ C).reshape(lead + (O[k], r[k + 1]))
            if k + 1 < d:
                t = jnp.moveaxis(t, 1, -2)
        y = t.reshape((B, math.prod(O)))
        if self.bias is not None:
            y = y + self.bias[None, :]
        return y


# ----------------------------------- main ------------------------------------

if __name__ == "__main__":
    key = jax.random.PRNGKey(0)
    k_param, k_x = jax.random.split(key)

    input_shape = (4, 4, 2)      # prod = 32
    output_shape = (4, 2, 4)     # prod = 32
    ranks = (3, 5)
    batch = 2

    layer = TTPallas(input_shape, output_shape, ranks, bias=True, key=k_param)

    x = jax.random.normal(k_x, (batch, math.prod(input_shape)), dtype=jnp.float32)

    y = layer(x)
    y = jax.block_until_ready(y)

    y_ref = jax.block_until_ready(layer.reference(x))

    assert y.shape == (batch, math.prod(output_shape))
    # bf16 MXU inputs with f32 accumulation -> loosened tolerance vs f32 ref.
    if not np.allclose(np.asarray(y), np.asarray(y_ref), rtol=3e-2, atol=3e-2):
        raise AssertionError("Pallas TT forward does not match reference")

    print("KERNEL_OK")
</pallas_src>

<mosaic_0001>
module attributes {stable_mosaic.version = 11 : i64} {
  func.func @_tt_gemm_bias_kernel(%arg0: i32, %arg1: memref<2x32xf32, #tpu.memory_space<vmem>>, %arg2: memref<32x32xbf16, #tpu.memory_space<vmem>>, %arg3: memref<1x32xf32, #tpu.memory_space<vmem>>, %arg4: memref<2x32xf32, #tpu.memory_space<vmem>>) attributes {dimension_semantics = [#tpu.dimension_semantics<parallel>], iteration_bounds = array<i64: 1>, scalar_prefetch = 0 : i64, scratch_operands = 0 : i64, tpu.core_type = #tpu.core_type<tc>, window_params = [{transform_indices = @transform_0, window_bounds = array<i64: 2, 32>}, {pipeline_mode = #tpu.pipeline_mode<synchronous>, transform_indices = @transform_1, window_bounds = array<i64: 32, 32>}, {pipeline_mode = #tpu.pipeline_mode<synchronous>, transform_indices = @transform_2, window_bounds = array<i64: 1, 32>}, {transform_indices = @transform_3, window_bounds = array<i64: 2, 32>}]} {
    %c0 = arith.constant 0 : index
    %c0_0 = arith.constant 0 : index
    %0 = vector.load %arg1[%c0, %c0_0] : memref<2x32xf32, #tpu.memory_space<vmem>>, vector<2x32xf32>
    %1 = arith.truncf %0 : vector<2x32xf32> to vector<2x32xbf16>
    %c0_1 = arith.constant 0 : index
    %c0_2 = arith.constant 0 : index
    %2 = vector.load %arg2[%c0_1, %c0_2] : memref<32x32xbf16, #tpu.memory_space<vmem>>, vector<32x32xbf16>
    %cst = arith.constant dense<0.000000e+00> : vector<2x32xf32>
    %3 = tpu.matmul %1, %2, %cst {dimension_numbers = #tpu.dot_dimension_numbers<[1], [0], [0], [1], [0, 0, 1, 1], [], []>} : vector<2x32xbf16>, vector<32x32xbf16>, vector<2x32xf32> -> vector<2x32xf32>
    %c0_3 = arith.constant 0 : index
    %c0_4 = arith.constant 0 : index
    %4 = vector.load %arg3[%c0_3, %c0_4] : memref<1x32xf32, #tpu.memory_space<vmem>>, vector<1x32xf32>
    %5 = vector.broadcast %4 : vector<1x32xf32> to vector<2x32xf32>
    %6 = arith.addf %3, %5 : vector<2x32xf32>
    %c0_5 = arith.constant 0 : index
    %c0_6 = arith.constant 0 : index
    %7 = vector.load %arg4[%c0_5, %c0_6] : memref<2x32xf32, #tpu.memory_space<vmem>>, vector<2x32xf32>
    tpu.vector_store %arg4[%c0_5, %c0_6], %6 {strides = array<i32>} : memref<2x32xf32, #tpu.memory_space<vmem>>, vector<2x32xf32>,
    return
  }
  func.func @transform_0(%arg0: i32) -> (i32, i32) {
    %c0_i32 = arith.constant 0 : i32
    %c0_i32_0 = arith.constant 0 : i32
    return %arg0, %c0_i32 : i32, i32
  }
  func.func @transform_1(%arg0: i32) -> (i32, i32) {
    %c0_i32 = arith.constant 0 : i32
    %c0_i32_0 = arith.constant 0 : i32
    %c0_i32_1 = arith.constant 0 : i32
    return %c0_i32, %c0_i32_0 : i32, i32
  }
  func.func @transform_2(%arg0: i32) -> (i32, i32) {
    %c0_i32 = arith.constant 0 : i32
    %c0_i32_0 = arith.constant 0 : i32
    %c0_i32_1 = arith.constant 0 : i32
    return %c0_i32, %c0_i32_0 : i32, i32
  }
  func.func @transform_3(%arg0: i32) -> (i32, i32) {
    %c0_i32 = arith.constant 0 : i32
    %c0_i32_0 = arith.constant 0 : i32
    return %arg0, %c0_i32 : i32, i32
  }
}

</mosaic_0001>

<bundles_post_ra>
// kernel: tpu_custom_call.1
= control target key start
LH: loop header
LB: loop body
LE: loop exit
PB: predicated region body
PF: predicated region fallthrough
CT: control target
= control target key end

     0   :  { %8 = vsyncpa [#allocation3], 0  ;;  %s237_s0 = inlined_call_operand.hbm [shape: f32[2,32], index: 0, kind: input, shape index: {}]   ;;  %s238_s1 = inlined_call_operand.hbm [shape: bf16[32,32], index: 1, kind: input, shape index: {}]   ;;  %s239_s2 = inlined_call_operand.vmem [shape: f32[1,32], index: 2, kind: input, shape index: {}]   ;;  %s240_s3 = inlined_call_operand.hbm [shape: f32[2,32], index: 3, kind: output, shape index: {}]  }
   0x1   :  { %9 = vsyncpa [#allocation6], 0 }
   0x2   :  { %10 = vsyncpa [#allocation4], 0  ;;  %s16_s14 = sshll.u32 %s237_s0, 4  ;;  %s200_s15 = smov [#allocation2]   ;;  %s17_s14 = int_to_ptr.hbm [resolvable:$true] %s16_s14 }
   0x3   :  { %s18_s16 = sshll.u32 %s200_s15, 4  ;;  %s26_s19 = sshll.u32 %s238_s1, 4  ;;  %s19_s16 = int_to_ptr.vmem [resolvable:$true] %s18_s16  ;;  %s27_s19 = int_to_ptr.hbm [resolvable:$true] %s26_s19 }
   0x4   :  { %21 = dma.hbm_to_vmem [thread:$0]  %s17_s14, 32, %s19_s16, [#allocation3]  }
   0x5   :  { %s201_s20 = smov [#allocation5]   ;;  %s202_s22 = smov 64  }
   0x6   :  { %s28_s21 = sshll.u32 %s201_s20, 4  ;;  %s203_s23 = smov 4   ;;  %s29_s21 = int_to_ptr.vmem [resolvable:$true] %s28_s21 }
   0x7   :  { %34 = dma.hbm_to_vmem [thread:$0]  %s27_s19, 256, %s29_s21, [#allocation6], %s202_s22, %s202_s22, %s203_s23  }
   0x8   :  { %194 = dma.done.wait [#allocation3], 32  }
   0x9   :  { %195 = vsyncadd [#allocation3], 4294967264 }
   0xa   :  { %196 = dma.done.wait [#allocation6], 256  }
   0xb   :  { %197 = vsyncadd [#allocation6], 4294967040  ;;  %v115_v0 = vld [vmem:[#allocation5 + $0x8] sm:$0xff]  ;;  %v114_v1 = vld [vmem:[#allocation5] sm:$0xff]  ;;  %vm68_vm0 = vcmask 261120   ;;  %s204_s24 = smov [#allocation7]  }
   0xc   :  { %78 = vmatpush.bf16.msra.mxu0 %v115_v0  ;;  %v46_v2 = vld [vmem:[#allocation2] sm:$0x3]  ;;  %s92_s25 = sshll.u32 %s204_s24, 4  ;;  %s94_s28 = sshll.u32 %s240_s3, 4  ;;  %vm85_vm1 = vcmask 254976   ;;  %s93_s25 = int_to_ptr.vmem [resolvable:$true] %s92_s25  ;;  %s95_s28 = int_to_ptr.hbm [resolvable:$true] %s94_s28 }
   0xd   :  { %v47_v3 = vpack.c.bf16 %v46_v2, %v46_v2  ;;  %v121_v4 = vld [vmem:[%s239_s2] ss:$0 sm:$0xff] }
  0x10   :  { %79 = vmatpush.bf16.msra.mxu0 %v114_v1 }
  0x13   :  { %113 = vmatmul.msk.bf16.vlgmr.msra.gmra.mxu0 %vm68_vm0, %v47_v3 }
  0x90   :  { %v81_v5 = vpop.f32.mrf.mxu0 }
  0x91   :  { %v82_v6 = vadd.f32 %v121_v4, %v81_v5 }
  0x93   :  { %86 = vst.msk [vmem:[#allocation7] sm:$0x3] %vm85_vm1, %v82_v6 }
  0x94   :  { %97 = dma.vmem_to_hbm [thread:$0]  %s93_s25, 32, %s95_s28, [#allocation4]  }
  0x98   :  { %v83_v7 = vpop.f32.mrf.mxu0 }
  0x99   :  { %198 = dma.done.wait [#allocation4], 32  }
  0x9a   :  { %199 = vsyncadd [#allocation4], 4294967264 }
  0x9b   :  { %102 = vsyncpa [#allocation3], 1 }
  0x9c   :  { %103 = vsyncpa [#allocation6], 1 }
  0x9d   :  { %104 = vsyncpa [#allocation4], 1 }

</bundles_post_ra>
